<compile_context>
chip_gen: v7x
topology: tpu7x:2x2x1
jax: 0.10.0
libtpu: 0.0.40
codegen_flags: <defaults>
</compile_context>

<pallas_src>
import math
from functools import partial

import jax
import jax.numpy as jnp
from jax.experimental import pallas as pl
from jax.experimental.pallas import tpu as pltpu

F32 = jnp.float32
BN_EPS = 1e-5


# --------------------------------------------------------------------------- #
# Fused kernel: conv3x3 (+bias)  ->  batch stats  ->  BN scale/shift  ->  ReLU
# --------------------------------------------------------------------------- #
def _convblock_kernel(x_ref, w_ref, b_ref, g_ref, beta_ref, mask_ref, o_ref,
                      conv_scr, sum_scr, sq_scr, *, H, W, inv_count):
    """Grid = (2, N): axis 0 is the phase, axis 1 the image (phase-major).

    Phase 0: 3x3 conv as 9 shifted-window matmuls on the flattened padded
             image (channel-major) + bias; cache the (Cout, MW) result in VMEM
             scratch and accumulate per-channel sum / sum-of-squares, masked to
             the valid (non-halo) columns.
    Phase 1: mean/var (var clamped >= 0), gamma/beta scale+shift, ReLU, store.

    Per image the padded input arrives as (Cin, (H+3)*(W+2)) so every shifted
    3x3 window is a static lane slice and the result rows are 288 lanes wide
    (lane-dense stores).  `mask_ref` (1, MW) zeroes the 2 junk halo columns per
    wide row out of the statistics; the wrapper slices them out of the output.
    """
    WP = W + 2          # wide row length (W + horizontal halo)
    MW = H * WP         # wide columns per image (lane dim of the result)
    cout = w_ref.shape[1]

    phase = pl.program_id(0)
    n = pl.program_id(1)

    @pl.when(jnp.logical_and(phase == 0, n == 0))
    def _init():
        sum_scr[...] = jnp.zeros_like(sum_scr)
        sq_scr[...] = jnp.zeros_like(sq_scr)

    @pl.when(phase == 0)
    def _conv_and_stats():
        acc = jnp.zeros((cout, MW), F32)
        # 3x3 conv = 9 shifted-window matmuls accumulated in VMEM (no im2col).
        for dy in range(3):
            for dx in range(3):
                start = dy * WP + dx
                patch = x_ref[0, :, start:start + MW]            # (Cin, MW)
                acc = acc + jnp.dot(w_ref[dy * 3 + dx], patch,
                                    preferred_element_type=F32)
        acc = acc + b_ref[...]                                   # (Cout,1) bias
        conv_scr[n] = acc                                        # cache for phase 1

        masked = acc * mask_ref[...]                             # zero junk cols
        sum_scr[...] += jnp.sum(masked, axis=1, keepdims=True)
        sq_scr[...] += jnp.sum(masked * acc, axis=1, keepdims=True)

    @pl.when(phase == 1)
    def _bn_relu_store():
        mean = sum_scr[...] * inv_count                          # (Cout, 1)
        var = jnp.maximum(sq_scr[...] * inv_count - mean * mean, 0.0)
        scale = g_ref[...] * jax.lax.rsqrt(var + BN_EPS)
        shift = beta_ref[...] - mean * scale
        o_ref[0] = jnp.maximum(conv_scr[n] * scale + shift, 0.0)  # (Cout, MW)


# --------------------------------------------------------------------------- #
# Wrapper
# --------------------------------------------------------------------------- #
def convblock_forward(x_nchw, params):
    """x_nchw: (N, Cin, H, W) f32  ->  (N, Cout, H, W) f32 (PyTorch parity)."""
    w, b, gamma, beta = params["w"], params["b"], params["gamma"], params["beta"]
    N, Cin, H, W = x_nchw.shape
    Cout = w.shape[-1]
    WP = W + 2
    MW = H * WP
    PADDED = (H + 3) * WP     # one extra bottom row keeps every window in bounds

    # Boundary layout glue: stay in NCHW, just zero-pad the halo and flatten the
    # spatial dims per (image, channel).  No transposes, no 9x im2col in HBM.
    x = jnp.pad(x_nchw.astype(F32), ((0, 0), (0, 0), (1, 2), (1, 1)))
    x_flat = x.reshape(N, Cin, PADDED)

    # (tap, Cout, Cin) weights so each tap matmul is (Cout,Cin) @ (Cin,MW).
    w9 = jnp.transpose(w.astype(F32), (0, 1, 3, 2)).reshape(9, Cout, Cin)

    # 0/1 mask of valid (non-halo) columns within each wide row.
    col = jnp.arange(MW, dtype=jnp.int32) % WP
    mask = (col < W).astype(F32).reshape(1, MW)

    kernel = partial(_convblock_kernel, H=H, W=W,
                     inv_count=1.0 / float(N * H * W))

    out_wide = pl.pallas_call(
        kernel,
        out_shape=jax.ShapeDtypeStruct((N, Cout, MW), F32),
        grid=(2, N),                                  # (phase, image), phase-major
        in_specs=[
            # Phase 0 walks the images; phase 1 pins to the last-fetched block
            # so no input DMA is issued while BN/ReLU runs from VMEM scratch.
            pl.BlockSpec((1, Cin, PADDED),
                         lambda p, n: ((1 - p) * n + p * (N - 1), 0, 0)),
            pl.BlockSpec((9, Cout, Cin), lambda p, n: (0, 0, 0)),
            pl.BlockSpec((Cout, 1), lambda p, n: (0, 0)),
            pl.BlockSpec((Cout, 1), lambda p, n: (0, 0)),
            pl.BlockSpec((Cout, 1), lambda p, n: (0, 0)),
            pl.BlockSpec((1, MW), lambda p, n: (0, 0)),
        ],
        # p*n pins the output block at 0 during phase 0 (never written there),
        # so only correct phase-1 data is ever DMA'd back to HBM.
        out_specs=pl.BlockSpec((1, Cout, MW), lambda p, n: (p * n, 0, 0)),
        scratch_shapes=[
            pltpu.VMEM((N, Cout, MW), F32),   # conv-result cache
            pltpu.VMEM((Cout, 1), F32),       # per-channel sum
            pltpu.VMEM((Cout, 1), F32),       # per-channel sum of squares
        ],
        compiler_params=pltpu.CompilerParams(
            # Global batch statistics + phase ordering require a serial grid.
            dimension_semantics=("arbitrary", "arbitrary")),
    )(x_flat,
      w9,
      b.reshape(Cout, 1).astype(F32),
      gamma.reshape(Cout, 1).astype(F32),
      beta.reshape(Cout, 1).astype(F32),
      mask)

    # Drop the 2 junk halo columns per wide row; output is already NCHW.
    return out_wide.reshape(N, Cout, H, WP)[:, :, :, :W]


# --------------------------------------------------------------------------- #
# Pure-JAX reference (for self-check) and PyTorch-style init
# --------------------------------------------------------------------------- #
def convblock_reference(x_nchw, params):
    w_oihw = jnp.transpose(params["w"], (3, 2, 0, 1))
    y = jax.lax.conv_general_dilated(
        x_nchw.astype(F32), w_oihw.astype(F32),
        window_strides=(1, 1), padding=((1, 1), (1, 1)),
        dimension_numbers=("NCHW", "OIHW", "NCHW"),
        precision=jax.lax.Precision.HIGHEST)
    y = y + params["b"].reshape(1, -1, 1, 1)
    mean = jnp.mean(y, axis=(0, 2, 3), keepdims=True)
    var = jnp.mean(jnp.square(y - mean), axis=(0, 2, 3), keepdims=True)
    yn = (y - mean) * jax.lax.rsqrt(var + BN_EPS)
    yn = yn * params["gamma"].reshape(1, -1, 1, 1) + params["beta"].reshape(1, -1, 1, 1)
    return jnp.maximum(yn, 0.0)


def init_convblock(key, cin, cout):
    """PyTorch defaults: conv W,b ~ U(-1/sqrt(fan_in), ...); BN gamma=1, beta=0."""
    kw, kb = jax.random.split(key)
    bound = 1.0 / math.sqrt(cin * 3 * 3)
    return {
        "w": jax.random.uniform(kw, (3, 3, cin, cout), F32, -bound, bound),
        "b": jax.random.uniform(kb, (cout,), F32, -bound, bound),
        "gamma": jnp.ones((cout,), F32),
        "beta": jnp.zeros((cout,), F32),
    }


if __name__ == "__main__":
    N, Cin, Cout, H, W = 2, 4, 8, 16, 16

    key = jax.random.PRNGKey(0)
    kx, kp = jax.random.split(key)
    x = jax.random.normal(kx, (N, Cin, H, W), dtype=F32)
    params = init_convblock(kp, Cin, Cout)

    fwd = jax.jit(lambda inp: convblock_forward(inp, params))
    out = jax.block_until_ready(fwd(x))

    assert out.shape == (N, Cout, H, W), out.shape
    assert bool(jnp.all(jnp.isfinite(out)))

    ref = convblock_reference(x, params)
    max_err = float(jnp.max(jnp.abs(out - ref)))
    assert bool(jnp.allclose(out, ref, atol=2e-3, rtol=2e-3)), max_err

    print("KERNEL_OK")
</pallas_src>

<mosaic_0001>
module attributes {stable_mosaic.version = 11 : i64} {
  func.func @_convblock_kernel(%arg0: i32, %arg1: i32, %arg2: memref<1x4x342xf32, #tpu.memory_space<vmem>>, %arg3: memref<9x8x4xf32, #tpu.memory_space<vmem>>, %arg4: memref<8x1xf32, #tpu.memory_space<vmem>>, %arg5: memref<8x1xf32, #tpu.memory_space<vmem>>, %arg6: memref<8x1xf32, #tpu.memory_space<vmem>>, %arg7: memref<1x288xf32, #tpu.memory_space<vmem>>, %arg8: memref<1x8x288xf32, #tpu.memory_space<vmem>>, %arg9: memref<2x8x288xf32, #tpu.memory_space<vmem>>, %arg10: memref<8x1xf32, #tpu.memory_space<vmem>>, %arg11: memref<8x1xf32, #tpu.memory_space<vmem>>) attributes {dimension_semantics = [#tpu.dimension_semantics<arbitrary>, #tpu.dimension_semantics<arbitrary>], iteration_bounds = array<i64: 2, 2>, scalar_prefetch = 0 : i64, scratch_operands = 3 : i64, tpu.core_type = #tpu.core_type<tc>, window_params = [{transform_indices = @transform_0, window_bounds = array<i64: 1, 4, 342>}, {pipeline_mode = #tpu.pipeline_mode<synchronous>, transform_indices = @transform_1, window_bounds = array<i64: 9, 8, 4>}, {pipeline_mode = #tpu.pipeline_mode<synchronous>, transform_indices = @transform_2, window_bounds = array<i64: 8, 1>}, {pipeline_mode = #tpu.pipeline_mode<synchronous>, transform_indices = @transform_3, window_bounds = array<i64: 8, 1>}, {pipeline_mode = #tpu.pipeline_mode<synchronous>, transform_indices = @transform_4, window_bounds = array<i64: 8, 1>}, {pipeline_mode = #tpu.pipeline_mode<synchronous>, transform_indices = @transform_5, window_bounds = array<i64: 1, 288>}, {transform_indices = @transform_6, window_bounds = array<i64: 1, 8, 288>}]} {
    %c0_i32 = arith.constant 0 : i32
    %0 = arith.cmpi eq, %arg0, %c0_i32 : i32
    %c0_i32_0 = arith.constant 0 : i32
    %1 = arith.cmpi eq, %arg1, %c0_i32_0 : i32
    %2 = arith.andi %0, %1 : i1
    %3 = arith.extui %2 : i1 to i32
    %c0_i32_1 = arith.constant 0 : i32
    %4 = arith.cmpi ne, %3, %c0_i32_1 : i32
    scf.if %4 {
      %cst = arith.constant 0.000000e+00 : f32
      %11 = vector.broadcast %cst : f32 to vector<8x1xf32>
      %c0 = arith.constant 0 : index
      %c0_5 = arith.constant 0 : index
      %12 = vector.load %arg10[%c0, %c0_5] : memref<8x1xf32, #tpu.memory_space<vmem>>, vector<8x1xf32>
      tpu.vector_store %arg10[%c0, %c0_5], %11 {strides = array<i32>} : memref<8x1xf32, #tpu.memory_space<vmem>>, vector<8x1xf32>,
      %cst_6 = arith.constant 0.000000e+00 : f32
      %13 = vector.broadcast %cst_6 : f32 to vector<8x1xf32>
      %c0_7 = arith.constant 0 : index
      %c0_8 = arith.constant 0 : index
      %14 = vector.load %arg11[%c0_7, %c0_8] : memref<8x1xf32, #tpu.memory_space<vmem>>, vector<8x1xf32>
      tpu.vector_store %arg11[%c0_7, %c0_8], %13 {strides = array<i32>} : memref<8x1xf32, #tpu.memory_space<vmem>>, vector<8x1xf32>,
    } else {
    }
    %c0_i32_2 = arith.constant 0 : i32
    %5 = arith.cmpi eq, %arg0, %c0_i32_2 : i32
    %6 = arith.extui %5 : i1 to i32
    %c0_i32_3 = arith.constant 0 : i32
    %7 = arith.cmpi ne, %6, %c0_i32_3 : i32
    scf.if %7 {
      %cst = arith.constant 0.000000e+00 : f32
      %11 = vector.broadcast %cst : f32 to vector<8x288xf32>
      %c0 = arith.constant 0 : index
      %c0_5 = arith.constant 0 : index
      %c0_6 = arith.constant 0 : index
      %12 = vector.load %arg2[%c0, %c0_5, %c0_6] : memref<1x4x342xf32, #tpu.memory_space<vmem>>, vector<1x4x288xf32>
      %13 = vector.shape_cast %12 : vector<1x4x288xf32> to vector<4x288xf32>
      %c0_7 = arith.constant 0 : index
      %c0_8 = arith.constant 0 : index
      %c0_9 = arith.constant 0 : index
      %14 = vector.load %arg3[%c0_7, %c0_8, %c0_9] : memref<9x8x4xf32, #tpu.memory_space<vmem>>, vector<1x8x4xf32>
      %15 = vector.shape_cast %14 : vector<1x8x4xf32> to vector<8x4xf32>
      %cst_10 = arith.constant dense<0.000000e+00> : vector<8x288xf32>
      %16 = tpu.matmul %15, %13, %cst_10 {dimension_numbers = #tpu.dot_dimension_numbers<[1], [0], [0], [1], [0, 0, 1, 1], [], []>} : vector<8x4xf32>, vector<4x288xf32>, vector<8x288xf32> -> vector<8x288xf32>
      %17 = arith.addf %11, %16 : vector<8x288xf32>
      %c0_11 = arith.constant 0 : index
      %c0_12 = arith.constant 0 : index
      %c1 = arith.constant 1 : index
      %18 = vector.load %arg2[%c0_11, %c0_12, %c1] : memref<1x4x342xf32, #tpu.memory_space<vmem>>, vector<1x4x288xf32>
      %19 = vector.shape_cast %18 : vector<1x4x288xf32> to vector<4x288xf32>
      %c1_13 = arith.constant 1 : index
      %c0_14 = arith.constant 0 : index
      %c0_15 = arith.constant 0 : index
      %20 = vector.load %arg3[%c1_13, %c0_14, %c0_15] : memref<9x8x4xf32, #tpu.memory_space<vmem>>, vector<1x8x4xf32>
      %21 = vector.shape_cast %20 : vector<1x8x4xf32> to vector<8x4xf32>
      %cst_16 = arith.constant dense<0.000000e+00> : vector<8x288xf32>
      %22 = tpu.matmul %21, %19, %cst_16 {dimension_numbers = #tpu.dot_dimension_numbers<[1], [0], [0], [1], [0, 0, 1, 1], [], []>} : vector<8x4xf32>, vector<4x288xf32>, vector<8x288xf32> -> vector<8x288xf32>
      %23 = arith.addf %17, %22 : vector<8x288xf32>
      %c0_17 = arith.constant 0 : index
      %c0_18 = arith.constant 0 : index
      %c2 = arith.constant 2 : index
      %24 = vector.load %arg2[%c0_17, %c0_18, %c2] : memref<1x4x342xf32, #tpu.memory_space<vmem>>, vector<1x4x288xf32>
      %25 = vector.shape_cast %24 : vector<1x4x288xf32> to vector<4x288xf32>
      %c2_19 = arith.constant 2 : index
      %c0_20 = arith.constant 0 : index
      %c0_21 = arith.constant 0 : index
      %26 = vector.load %arg3[%c2_19, %c0_20, %c0_21] : memref<9x8x4xf32, #tpu.memory_space<vmem>>, vector<1x8x4xf32>
      %27 = vector.shape_cast %26 : vector<1x8x4xf32> to vector<8x4xf32>
      %cst_22 = arith.constant dense<0.000000e+00> : vector<8x288xf32>
      %28 = tpu.matmul %27, %25, %cst_22 {dimension_numbers = #tpu.dot_dimension_numbers<[1], [0], [0], [1], [0, 0, 1, 1], [], []>} : vector<8x4xf32>, vector<4x288xf32>, vector<8x288xf32> -> vector<8x288xf32>
      %29 = arith.addf %23, %28 : vector<8x288xf32>
      %c0_23 = arith.constant 0 : index
      %c0_24 = arith.constant 0 : index
      %c18 = arith.constant 18 : index
      %30 = vector.load %arg2[%c0_23, %c0_24, %c18] : memref<1x4x342xf32, #tpu.memory_space<vmem>>, vector<1x4x288xf32>
      %31 = vector.shape_cast %30 : vector<1x4x288xf32> to vector<4x288xf32>
      %c3 = arith.constant 3 : index
      %c0_25 = arith.constant 0 : index
      %c0_26 = arith.constant 0 : index
      %32 = vector.load %arg3[%c3, %c0_25, %c0_26] : memref<9x8x4xf32, #tpu.memory_space<vmem>>, vector<1x8x4xf32>
      %33 = vector.shape_cast %32 : vector<1x8x4xf32> to vector<8x4xf32>
      %cst_27 = arith.constant dense<0.000000e+00> : vector<8x288xf32>
      %34 = tpu.matmul %33, %31, %cst_27 {dimension_numbers = #tpu.dot_dimension_numbers<[1], [0], [0], [1], [0, 0, 1, 1], [], []>} : vector<8x4xf32>, vector<4x288xf32>, vector<8x288xf32> -> vector<8x288xf32>
      %35 = arith.addf %29, %34 : vector<8x288xf32>
      %c0_28 = arith.constant 0 : index
      %c0_29 = arith.constant 0 : index
      %c19 = arith.constant 19 : index
      %36 = vector.load %arg2[%c0_28, %c0_29, %c19] : memref<1x4x342xf32, #tpu.memory_space<vmem>>, vector<1x4x288xf32>
      %37 = vector.shape_cast %36 : vector<1x4x288xf32> to vector<4x288xf32>
      %c4 = arith.constant 4 : index
      %c0_30 = arith.constant 0 : index
      %c0_31 = arith.constant 0 : index
      %38 = vector.load %arg3[%c4, %c0_30, %c0_31] : memref<9x8x4xf32, #tpu.memory_space<vmem>>, vector<1x8x4xf32>
      %39 = vector.shape_cast %38 : vector<1x8x4xf32> to vector<8x4xf32>
      %cst_32 = arith.constant dense<0.000000e+00> : vector<8x288xf32>
      %40 = tpu.matmul %39, %37, %cst_32 {dimension_numbers = #tpu.dot_dimension_numbers<[1], [0], [0], [1], [0, 0, 1, 1], [], []>} : vector<8x4xf32>, vector<4x288xf32>, vector<8x288xf32> -> vector<8x288xf32>
      %41 = arith.addf %35, %40 : vector<8x288xf32>
      %c0_33 = arith.constant 0 : index
      %c0_34 = arith.constant 0 : index
      %c20 = arith.constant 20 : index
      %42 = vector.load %arg2[%c0_33, %c0_34, %c20] : memref<1x4x342xf32, #tpu.memory_space<vmem>>, vector<1x4x288xf32>
      %43 = vector.shape_cast %42 : vector<1x4x288xf32> to vector<4x288xf32>
      %c5 = arith.constant 5 : index
      %c0_35 = arith.constant 0 : index
      %c0_36 = arith.constant 0 : index
      %44 = vector.load %arg3[%c5, %c0_35, %c0_36] : memref<9x8x4xf32, #tpu.memory_space<vmem>>, vector<1x8x4xf32>
      %45 = vector.shape_cast %44 : vector<1x8x4xf32> to vector<8x4xf32>
      %cst_37 = arith.constant dense<0.000000e+00> : vector<8x288xf32>
      %46 = tpu.matmul %45, %43, %cst_37 {dimension_numbers = #tpu.dot_dimension_numbers<[1], [0], [0], [1], [0, 0, 1, 1], [], []>} : vector<8x4xf32>, vector<4x288xf32>, vector<8x288xf32> -> vector<8x288xf32>
      %47 = arith.addf %41, %46 : vector<8x288xf32>
      %c0_38 = arith.constant 0 : index
      %c0_39 = arith.constant 0 : index
      %c36 = arith.constant 36 : index
      %48 = vector.load %arg2[%c0_38, %c0_39, %c36] : memref<1x4x342xf32, #tpu.memory_space<vmem>>, vector<1x4x288xf32>
      %49 = vector.shape_cast %48 : vector<1x4x288xf32> to vector<4x288xf32>
      %c6 = arith.constant 6 : index
      %c0_40 = arith.constant 0 : index
      %c0_41 = arith.constant 0 : index
      %50 = vector.load %arg3[%c6, %c0_40, %c0_41] : memref<9x8x4xf32, #tpu.memory_space<vmem>>, vector<1x8x4xf32>
      %51 = vector.shape_cast %50 : vector<1x8x4xf32> to vector<8x4xf32>
      %cst_42 = arith.constant dense<0.000000e+00> : vector<8x288xf32>
      %52 = tpu.matmul %51, %49, %cst_42 {dimension_numbers = #tpu.dot_dimension_numbers<[1], [0], [0], [1], [0, 0, 1, 1], [], []>} : vector<8x4xf32>, vector<4x288xf32>, vector<8x288xf32> -> vector<8x288xf32>
      %53 = arith.addf %47, %52 : vector<8x288xf32>
      %c0_43 = arith.constant 0 : index
      %c0_44 = arith.constant 0 : index
      %c37 = arith.constant 37 : index
      %54 = vector.load %arg2[%c0_43, %c0_44, %c37] : memref<1x4x342xf32, #tpu.memory_space<vmem>>, vector<1x4x288xf32>
      %55 = vector.shape_cast %54 : vector<1x4x288xf32> to vector<4x288xf32>
      %c7 = arith.constant 7 : index
      %c0_45 = arith.constant 0 : index
      %c0_46 = arith.constant 0 : index
      %56 = vector.load %arg3[%c7, %c0_45, %c0_46] : memref<9x8x4xf32, #tpu.memory_space<vmem>>, vector<1x8x4xf32>
      %57 = vector.shape_cast %56 : vector<1x8x4xf32> to vector<8x4xf32>
      %cst_47 = arith.constant dense<0.000000e+00> : vector<8x288xf32>
      %58 = tpu.matmul %57, %55, %cst_47 {dimension_numbers = #tpu.dot_dimension_numbers<[1], [0], [0], [1], [0, 0, 1, 1], [], []>} : vector<8x4xf32>, vector<4x288xf32>, vector<8x288xf32> -> vector<8x288xf32>
      %59 = arith.addf %53, %58 : vector<8x288xf32>
      %c0_48 = arith.constant 0 : index
      %c0_49 = arith.constant 0 : index
      %c38 = arith.constant 38 : index
      %60 = vector.load %arg2[%c0_48, %c0_49, %c38] : memref<1x4x342xf32, #tpu.memory_space<vmem>>, vector<1x4x288xf32>
      %61 = vector.shape_cast %60 : vector<1x4x288xf32> to vector<4x288xf32>
      %c8 = arith.constant 8 : index
      %c0_50 = arith.constant 0 : index
      %c0_51 = arith.constant 0 : index
      %62 = vector.load %arg3[%c8, %c0_50, %c0_51] : memref<9x8x4xf32, #tpu.memory_space<vmem>>, vector<1x8x4xf32>
      %63 = vector.shape_cast %62 : vector<1x8x4xf32> to vector<8x4xf32>
      %cst_52 = arith.constant dense<0.000000e+00> : vector<8x288xf32>
      %64 = tpu.matmul %63, %61, %cst_52 {dimension_numbers = #tpu.dot_dimension_numbers<[1], [0], [0], [1], [0, 0, 1, 1], [], []>} : vector<8x4xf32>, vector<4x288xf32>, vector<8x288xf32> -> vector<8x288xf32>
      %65 = arith.addf %59, %64 : vector<8x288xf32>
      %c0_53 = arith.constant 0 : index
      %c0_54 = arith.constant 0 : index
      %66 = vector.load %arg4[%c0_53, %c0_54] : memref<8x1xf32, #tpu.memory_space<vmem>>, vector<8x1xf32>
      %67 = vector.broadcast %66 : vector<8x1xf32> to vector<8x288xf32>
      %68 = arith.addf %65, %67 : vector<8x288xf32>
      %69 = arith.index_cast %arg1 : i32 to index
      %c0_55 = arith.constant 0 : index
      %c0_56 = arith.constant 0 : index
      %70 = vector.load %arg9[%69, %c0_55, %c0_56] : memref<2x8x288xf32, #tpu.memory_space<vmem>>, vector<1x8x288xf32>
      %71 = vector.shape_cast %70 : vector<1x8x288xf32> to vector<8x288xf32>
      %72 = vector.shape_cast %68 : vector<8x288xf32> to vector<1x8x288xf32>
      tpu.vector_store %arg9[%69, %c0_55, %c0_56], %72 {strides = array<i32>} : memref<2x8x288xf32, #tpu.memory_space<vmem>>, vector<1x8x288xf32>,
      %c0_57 = arith.constant 0 : index
      %c0_58 = arith.constant 0 : index
      %73 = vector.load %arg7[%c0_57, %c0_58] : memref<1x288xf32, #tpu.memory_space<vmem>>, vector<1x288xf32>
      %74 = vector.broadcast %73 : vector<1x288xf32> to vector<8x288xf32>
      %75 = arith.mulf %68, %74 : vector<8x288xf32>
      %c0_59 = arith.constant 0 : index
      %c0_60 = arith.constant 0 : index
      %76 = vector.load %arg10[%c0_59, %c0_60] : memref<8x1xf32, #tpu.memory_space<vmem>>, vector<8x1xf32>
      %cst_61 = arith.constant dense<0.000000e+00> : vector<8xf32>
      %77 = vector.multi_reduction <add>, %75, %cst_61 [1] : vector<8x288xf32> to vector<8xf32>
      %78 = vector.shape_cast %77 : vector<8xf32> to vector<8x1xf32>
      %79 = arith.addf %76, %78 : vector<8x1xf32>
      %c0_62 = arith.constant 0 : index
      %c0_63 = arith.constant 0 : index
      %80 = vector.load %arg10[%c0_62, %c0_63] : memref<8x1xf32, #tpu.memory_space<vmem>>, vector<8x1xf32>
      tpu.vector_store %arg10[%c0_62, %c0_63], %79 {strides = array<i32>} : memref<8x1xf32, #tpu.memory_space<vmem>>, vector<8x1xf32>,
      %c0_64 = arith.constant 0 : index
      %c0_65 = arith.constant 0 : index
      %81 = vector.load %arg11[%c0_64, %c0_65] : memref<8x1xf32, #tpu.memory_space<vmem>>, vector<8x1xf32>
      %82 = arith.mulf %75, %68 : vector<8x288xf32>
      %cst_66 = arith.constant dense<0.000000e+00> : vector<8xf32>
      %83 = vector.multi_reduction <add>, %82, %cst_66 [1] : vector<8x288xf32> to vector<8xf32>
      %84 = vector.shape_cast %83 : vector<8xf32> to vector<8x1xf32>
      %85 = arith.addf %81, %84 : vector<8x1xf32>
      %c0_67 = arith.constant 0 : index
      %c0_68 = arith.constant 0 : index
      %86 = vector.load %arg11[%c0_67, %c0_68] : memref<8x1xf32, #tpu.memory_space<vmem>>, vector<8x1xf32>
      tpu.vector_store %arg11[%c0_67, %c0_68], %85 {strides = array<i32>} : memref<8x1xf32, #tpu.memory_space<vmem>>, vector<8x1xf32>,
    } else {
    }
    %c1_i32 = arith.constant 1 : i32
    %8 = arith.cmpi eq, %arg0, %c1_i32 : i32
    %9 = arith.extui %8 : i1 to i32
    %c0_i32_4 = arith.constant 0 : i32
    %10 = arith.cmpi ne, %9, %c0_i32_4 : i32
    scf.if %10 {
      %c0 = arith.constant 0 : index
      %c0_5 = arith.constant 0 : index
      %11 = vector.load %arg10[%c0, %c0_5] : memref<8x1xf32, #tpu.memory_space<vmem>>, vector<8x1xf32>
      %cst = arith.constant 0.001953125 : f32
      %12 = vector.broadcast %cst : f32 to vector<8x1xf32>
      %13 = arith.mulf %11, %12 : vector<8x1xf32>
      %c0_6 = arith.constant 0 : index
      %c0_7 = arith.constant 0 : index
      %14 = vector.load %arg11[%c0_6, %c0_7] : memref<8x1xf32, #tpu.memory_space<vmem>>, vector<8x1xf32>
      %cst_8 = arith.constant 0.001953125 : f32
      %15 = vector.broadcast %cst_8 : f32 to vector<8x1xf32>
      %16 = arith.mulf %14, %15 : vector<8x1xf32>
      %17 = arith.mulf %13, %13 : vector<8x1xf32>
      %18 = arith.subf %16, %17 : vector<8x1xf32>
      %cst_9 = arith.constant 0.000000e+00 : f32
      %19 = vector.broadcast %cst_9 : f32 to vector<8x1xf32>
      %20 = arith.maximumf %18, %19 : vector<8x1xf32>
      %c0_10 = arith.constant 0 : index
      %c0_11 = arith.constant 0 : index
      %21 = vector.load %arg5[%c0_10, %c0_11] : memref<8x1xf32, #tpu.memory_space<vmem>>, vector<8x1xf32>
      %cst_12 = arith.constant 9.99999974E-6 : f32
      %22 = vector.broadcast %cst_12 : f32 to vector<8x1xf32>
      %23 = arith.addf %20, %22 : vector<8x1xf32>
      %24 = math.rsqrt %23 : vector<8x1xf32>
      %25 = arith.mulf %21, %24 : vector<8x1xf32>
      %c0_13 = arith.constant 0 : index
      %c0_14 = arith.constant 0 : index
      %26 = vector.load %arg6[%c0_13, %c0_14] : memref<8x1xf32, #tpu.memory_space<vmem>>, vector<8x1xf32>
      %27 = arith.mulf %13, %25 : vector<8x1xf32>
      %28 = arith.subf %26, %27 : vector<8x1xf32>
      %29 = arith.index_cast %arg1 : i32 to index
      %c0_15 = arith.constant 0 : index
      %c0_16 = arith.constant 0 : index
      %30 = vector.load %arg9[%29, %c0_15, %c0_16] : memref<2x8x288xf32, #tpu.memory_space<vmem>>, vector<1x8x288xf32>
      %31 = vector.shape_cast %30 : vector<1x8x288xf32> to vector<8x288xf32>
      %32 = vector.broadcast %25 : vector<8x1xf32> to vector<8x288xf32>
      %33 = arith.mulf %31, %32 : vector<8x288xf32>
      %34 = vector.broadcast %28 : vector<8x1xf32> to vector<8x288xf32>
      %35 = arith.addf %33, %34 : vector<8x288xf32>
      %cst_17 = arith.constant 0.000000e+00 : f32
      %36 = vector.broadcast %cst_17 : f32 to vector<8x288xf32>
      %37 = arith.maximumf %35, %36 : vector<8x288xf32>
      %c0_18 = arith.constant 0 : index
      %c0_19 = arith.constant 0 : index
      %c0_20 = arith.constant 0 : index
      %38 = vector.load %arg8[%c0_18, %c0_19, %c0_20] : memref<1x8x288xf32, #tpu.memory_space<vmem>>, vector<1x8x288xf32>
      %39 = vector.shape_cast %38 : vector<1x8x288xf32> to vector<8x288xf32>
      %40 = vector.shape_cast %37 : vector<8x288xf32> to vector<1x8x288xf32>
      tpu.vector_store %arg8[%c0_18, %c0_19, %c0_20], %40 {strides = array<i32>} : memref<1x8x288xf32, #tpu.memory_space<vmem>>, vector<1x8x288xf32>,
    } else {
    }
    return
  }
  func.func @transform_0(%arg0: i32, %arg1: i32) -> (i32, i32, i32) {
    %c1_i32 = arith.constant 1 : i32
    %0 = arith.subi %c1_i32, %arg0 : i32
    %1 = arith.muli %0, %arg1 : i32
    %c1_i32_0 = arith.constant 1 : i32
    %2 = arith.muli %arg0, %c1_i32_0 : i32
    %3 = arith.addi %1, %2 : i32
    %c0_i32 = arith.constant 0 : i32
    %c0_i32_1 = arith.constant 0 : i32
    %c0_i32_2 = arith.constant 0 : i32
    return %3, %c0_i32, %c0_i32_1 : i32, i32, i32
  }
  func.func @transform_1(%arg0: i32, %arg1: i32) -> (i32, i32, i32) {
    %c0_i32 = arith.constant 0 : i32
    %c0_i32_0 = arith.constant 0 : i32
    %c0_i32_1 = arith.constant 0 : i32
    %c0_i32_2 = arith.constant 0 : i32
    return %c0_i32, %c0_i32_0, %c0_i32_1 : i32, i32, i32
  }
  func.func @transform_2(%arg0: i32, %arg1: i32) -> (i32, i32) {
    %c0_i32 = arith.constant 0 : i32
    %c0_i32_0 = arith.constant 0 : i32
    %c0_i32_1 = arith.constant 0 : i32
    return %c0_i32, %c0_i32_0 : i32, i32
  }
  func.func @transform_3(%arg0: i32, %arg1: i32) -> (i32, i32) {
    %c0_i32 = arith.constant 0 : i32
    %c0_i32_0 = arith.constant 0 : i32
    %c0_i32_1 = arith.constant 0 : i32
    return %c0_i32, %c0_i32_0 : i32, i32
  }
  func.func @transform_4(%arg0: i32, %arg1: i32) -> (i32, i32) {
    %c0_i32 = arith.constant 0 : i32
    %c0_i32_0 = arith.constant 0 : i32
    %c0_i32_1 = arith.constant 0 : i32
    return %c0_i32, %c0_i32_0 : i32, i32
  }
  func.func @transform_5(%arg0: i32, %arg1: i32) -> (i32, i32) {
    %c0_i32 = arith.constant 0 : i32
    %c0_i32_0 = arith.constant 0 : i32
    %c0_i32_1 = arith.constant 0 : i32
    return %c0_i32, %c0_i32_0 : i32, i32
  }
  func.func @transform_6(%arg0: i32, %arg1: i32) -> (i32, i32, i32) {
    %0 = arith.muli %arg0, %arg1 : i32
    %c0_i32 = arith.constant 0 : i32
    %c0_i32_0 = arith.constant 0 : i32
    %c0_i32_1 = arith.constant 0 : i32
    return %0, %c0_i32, %c0_i32_0 : i32, i32, i32
  }
}

</mosaic_0001>

<bundles_post_ra>
// kernel: _lambda_.1
= control target key start
LH: loop header
LB: loop body
LE: loop exit
PB: predicated region body
PF: predicated region fallthrough
CT: control target
= control target key end

     0   :  { %s2276_s21 = smov 0   ;;  %s2278_s22 = smov 0   ;;  %s2519_s0 = inlined_call_operand.vmem [shape: f32[2,4,342], index: 0, kind: input, shape index: {}]   ;;  %s2520_s1 = inlined_call_operand.vmem [shape: f32[9,8,4], index: 1, kind: input, shape index: {}]   ;;  %s2521_s2 = inlined_call_operand.vmem [shape: f32[8,1], index: 2, kind: input, shape index: {}]   ;;  %s2522_s3 = inlined_call_operand.vmem [shape: f32[8,1], index: 3, kind: input, shape index: {}]   ;;  %s2523_s4 = inlined_call_operand.vmem [shape: f32[8,1], index: 4, kind: input, shape index: {}]   ;;  %s2524_s5 = inlined_call_operand.vmem [shape: f32[1,288], index: 5, kind: input, shape index: {}]   ;;  %s2525_s6 = inlined_call_operand.vmem [shape: f32[2,8,288], index: 6, kind: output, shape index: {}]  }
   0x1   :  { %s2280_s23 = smov 0   ;;  %s2282_s24 = smov 0  }
   0x2   :  { %s2284_s25 = smov 0  }
   0x3 LB: > { %s25_s26 = sadd.s32 1, %s2218_s23  ;;  %s28_s27 = sadd.s32 1, %s2222_s24  ;;  %s2226_s25 = sphi %s2284_s25, %s16_s25   ;;  %s2222_s24 = sphi %s2282_s24, %s2529_s24   ;;  %s2218_s23 = sphi %s2280_s23, %s2528_s23   ;;  %s2214_s22 = sphi %s2278_s22, %s2527_s22   ;;  %s2210_s21 = sphi %s2276_s21, %s2526_s21  }
   0x4   : > { %p26_p0 = scmp.ge.s32.totalorder %s25_s26, 2  ;;  %p1985_p1 = scmp.ge.s32.totalorder %s2226_s25, 1 }
   0x5   : > { %p238_p2 = scmp.lt.s32.totalorder %s2226_s25, 5 }
   0x6   : > { %s2531_s26 = smov (%p26_p0, %s25_s26), 0  ;;  %s2533_s27 = smov (!%p26_p0, %s28_s27), %s2222_s24 }
   0x7   : > { %p239_p3 = pnand %p1985_p1, %p238_p2  ;;  %p30_p4 = scmp.ge.s32.totalorder %s2533_s27, 2 }
   0x8   : > { %s272_s28 = ssub.s32 (!%p239_p3), 1, %s2214_s22  ;;  %s283_s29 = smul.u32 (!%p239_p3), %s2210_s21, %s2214_s22 }
   0x9   : > { %s2535_s27 = smov (%p30_p4, %s2533_s27), 0  ;;  %242 = sbr.rel (%p239_p3) target bundleno = 750 (0x2ee), region = 44 }
   0xa   : > { %s273_s30 = smul.u32 (!%p239_p3), %s2210_s21, %s272_s28  ;;  %p290_p5 = scmp.eq.s32.totalorder (!%p239_p3), %s2214_s22, 0 }
   0xb   : > { %p284_p6 = scmp.lt.s32.totalorder (!%p239_p3), %s283_s29, 1  ;;  %p291_p7 = scmp.eq.s32.totalorder (!%p239_p3), %s2210_s21, 0 }
   0xc   : > { %s274_s7 = sadd.s32 (!%p239_p3), %s2214_s22, %s273_s30 }
   0xd   : > { %p275_p8 = scmp.lt.s32.totalorder (!%p239_p3), %s274_s7, 1  ;;  %p292_p9 = pnand (!%p239_p3), %p291_p7, %p290_p5 }
  0x10   : > { %s2537_s29 = smov (!%p284_p6, %s283_s29), 1  ;;  %s2539_s7 = smov (!%p275_p8, %s274_s7), 1 }
  0x11   : > { %s2129_s8 = smul.u32 24, %s2537_s29  ;;  %vm296_vm0 = vcmask (!%p292_p9), 7168   ;;  %v2228_v0 = vmov (!%p292_p9), 0.0  }
  0x12   : > { %s2128_s9 = smul.u32 12, %s2539_s7  ;;  %297 = vst.msk [vmem:[#allocation3] sm:$0xff] (!%p292_p9), %vm296_vm0, %v2228_v0  ;;  %298 = vst.msk [vmem:[#allocation4] sm:$0xff] (!%p292_p9), %vm296_vm0, %v2228_v0 }
  0x13   : > { %s2320_s12 = scalar_lea.vmem %s2525_s6, %s2129_s8  ;;  %295 = sbr.rel (%p292_p9) target bundleno = 26 (0x1a), region = 48 }
  0x14   : > { %s2325_s15 = scalar_lea.vmem %s2519_s0, %s2128_s9 }
  0x1a PF: > { %p1988_p10 = scmp.ne.s32.totalorder %s2214_s22, 0 }
  0x1b   : > { %v2329_v1 = vld [vmem:[%s2325_s15] sm:$0xff] (!%p1988_p10)  ;;  %s2229_s16 = smov (!%p1988_p10), 127   ;;  %v2230_v3 = vmov (!%p1988_p10), 0.0   ;;  %v2340_v4 = vld [vmem:[%s2325_s15 + $0x8] sm:$0xf] (!%p1988_p10)  ;;  %s2231_s17 = smov (!%p1988_p10), 126  }
  0x1c   : > { %301 = sbr.rel (%p1988_p10) target bundleno = 584 (0x248), region = 52  ;;  %310 = vrot.lane.b32.xlu1 (!%p1988_p10), %v2329_v1, %s2229_s16  ;;  %v2334_v2 = vcombine.high (!%p1988_p10), %v2329_v1, %v2329_v1  ;;  %2067 = vmatprep.subr.mxu1 (!%p1988_p10), %v2230_v3  ;;  %vm2232_vm1 = vmmov (!%p1988_p10), 0   ;;  %v622_v5 = vld [vmem:[%s2325_s15 + $0x8] sm:$0xf] (!%p1988_p10)  ;;  %s2233_s18 = smov (!%p1988_p10), 110   ;;  %v1804_v12 = vld [vmem:[%s2521_s2] sm:$0xff] (!%p1988_p10) }
  0x1d   : > { %394 = vmatprep.mubr.f32.mxu0 (!%p1988_p10), %v2230_v3  ;;  %2069 = vmatprep.mubr.msk.f32.mxu1 (!%p1988_p10), %vm2232_vm1, %v2230_v3  ;;  %v791_v6 = vld [vmem:[%s2325_s15 + $0x8] sm:$0xf] (!%p1988_p10)  ;;  %s2234_s19 = smov (!%p1988_p10), 109   ;;  %s2235_s20 = smov (!%p1988_p10), 108   ;;  %v2239_v13 = vmov (!%p1988_p10), 0   ;;  %vm323_vm2 = vcmask (!%p1988_p10), 1043456  }
  0x1e   : > { %312 = vrot.lane.b32.xlu0 (!%p1988_p10), %v2334_v2, %s2229_s16  ;;  %v960_v7 = vld [vmem:[%s2325_s15 + $0x8] sm:$0xf] (!%p1988_p10)  ;;  %s2236_s28 = smov (!%p1988_p10), 92   ;;  %s2237_s29 = smov (!%p1988_p10), 91   ;;  %vm316_vm3 = vcmask (!%p1988_p10), 1039360   ;;  %vm319_vm4 = vcmask (!%p1988_p10), 31744  }
  0x1f   : > { %v1129_v8 = vld [vmem:[%s2325_s15 + $0x8] sm:$0xf] (!%p1988_p10)  ;;  %s2238_s30 = smov (!%p1988_p10), 90   ;;  %2183 = vset.pattern.permute.xlu0 (!%p1988_p10), %v2239_v13  ;;  %vm634_vm5 = vcmask (!%p1988_p10), 1031168   ;;  %v304_v25 = vld [vmem:[%s2520_s1] sm:$0xff] (!%p1988_p10)  ;;  %vm803_vm6 = vcmask (!%p1988_p10), 900096  }
  0x20   : > { %630 = vrot.lane.b32.xlu1 (!%p1988_p10), %v2334_v2, %s2231_s17  ;;  %v1298_v9 = vld [vmem:[%s2325_s15 + $0x8] sm:$0xf] (!%p1988_p10)  ;;  %v2000_v30 = vld [vmem:[%s2520_s1 + $0x10] sm:$0xff] (!%p1988_p10)  ;;  %v2006_v32 = vld [vmem:[%s2520_s1 + $0x18] sm:$0xff] (!%p1988_p10)  ;;  %vm972_vm7 = vcmask (!%p1988_p10), 891904   ;;  %vm1141_vm8 = vcmask (!%p1988_p10), 883712  }
  0x21   : > { %v1467_v10 = vld [vmem:[%s2325_s15 + $0x8] sm:$0xf] (!%p1988_p10)  ;;  %v2012_v35 = vld [vmem:[%s2520_s1 + $0x20] sm:$0xff] (!%p1988_p10)  ;;  %v2024_v47 = vld [vmem:[%s2520_s1 + $0x30] sm:$0xff] (!%p1988_p10)  ;;  %vm1310_vm9 = vcmask (!%p1988_p10), 752640   ;;  %vm1479_vm10 = vcmask (!%p1988_p10), 744448  }
  0x22   : > { %314 = vrot.lane.b32.xlu0 (!%p1988_p10), %v2340_v4, %s2229_s16  ;;  %v1636_v11 = vld [vmem:[%s2325_s15 + $0x8] sm:$0xf] (!%p1988_p10)  ;;  %v2030_v50 = vld [vmem:[%s2520_s1 + $0x38] sm:$0xff] (!%p1988_p10)  ;;  %v2036_v54 = vld [vmem:[%s2520_s1 + $0x40] sm:$0xff] (!%p1988_p10)  ;;  %vm1648_vm11 = vcmask (!%p1988_p10), 736256   ;;  %s2047_s11 = smul.u32 (!%p1988_p10), 24, %s2210_s21 }
  0x23   : > { %v1989_v19 = vld [vmem:[%s2520_s1 + $0x8] sm:$0xff]  ;;  %vm1818_vm12 = vcmask 261120   ;;  %vm1847_vm13 = vcmask 7168  }
  0x24   : > { %628 = vrot.lane.b32.xlu1 %v2329_v1, %s2231_s17  ;;  %v2018_v40 = vld [vmem:[%s2520_s1 + $0x28] sm:$0xff]  ;;  %s1815_s13 = scalar_lea.vmem [#allocation2], %s2047_s11 }
  0x26   : > { %632 = vrot.lane.b32.xlu0 %v622_v5, %s2231_s17 }
  0x28   : > { %801 = vrot.lane.b32.xlu1 %v791_v6, %s2233_s18 }
  0x2a   : > { %799 = vrot.lane.b32.xlu0 %v2334_v2, %s2233_s18 }
  0x2c   : > { %968 = vrot.lane.b32.xlu1 %v2334_v2, %s2234_s19 }
  0x2e   : > { %797 = vrot.lane.b32.xlu0 %v2329_v1, %s2233_s18 }
  0x30   : > { %966 = vrot.lane.b32.xlu1 %v2329_v1, %s2234_s19 }
  0x32   : > { %970 = vrot.lane.b32.xlu0 %v960_v7, %s2234_s19 }
  0x34   : > { %1139 = vrot.lane.b32.xlu1 %v1129_v8, %s2235_s20 }
  0x36   : > { %1137 = vrot.lane.b32.xlu0 %v2334_v2, %s2235_s20 }
  0x38   : > { %1306 = vrot.lane.b32.xlu1 %v2334_v2, %s2236_s28 }
  0x3a   : > { %1135 = vrot.lane.b32.xlu0 %v2329_v1, %s2235_s20 }
  0x3c   : > { %1304 = vrot.lane.b32.xlu1 %v2329_v1, %s2236_s28 }
  0x3e   : > { %1308 = vrot.lane.b32.xlu0 %v1298_v9, %s2236_s28 }
  0x40   : > { %1477 = vrot.lane.b32.xlu1 %v1467_v10, %s2237_s29 }
  0x42   : > { %1475 = vrot.lane.b32.xlu0 %v2334_v2, %s2237_s29 }
  0x44   : > { %1644 = vrot.lane.b32.xlu1 %v2334_v2, %s2238_s30 }
  0x46   : > { %1473 = vrot.lane.b32.xlu0 %v2329_v1, %s2237_s29 }
  0x48   : > { %1642 = vrot.lane.b32.xlu1 %v2329_v1, %s2238_s30 }
  0x4a   : > { %1646 = vrot.lane.b32.xlu0 %v1636_v11, %s2238_s30 }
  0x4e   : > { %1807 = vperm.xlu0 %2183, %v1804_v12  }
  0x8e   : > { %v311_v14 = vpop.permute.xlu1 %310 }
  0x90   : > { %v313_v15 = vpop.permute.xlu0 %312 }
  0x91   : > { %v317_v20 = vsel %vm316_vm3, %v311_v14, %v313_v15 }
  0x92   : > { %v631_v16 = vpop.permute.xlu1 %630 }
  0x94   : > { %v315_v17 = vpop.permute.xlu0 %314 }
  0x95   : > { %2068 = vmatpush3.msk.msra.mxu1 %vm323_vm2, %v315_v17  ;;  %v318_v18 = vsel %vm316_vm3, %v313_v15, %v315_v17 }
  0x96   : > { %1990 = vmatprep.subr.msk.mxu0 %vm323_vm2, %v318_v18  ;;  %v629_v21 = vpop.permute.xlu1 %628  ;;  %2070 = vmatmul.mubr.msk.f32.vlgmr.msra.gmra.mrb[0].mxu1 %vm319_vm4, %v1989_v19 }
  0x97   : > { %1991 = vmatpush1.msk.msra.mxu0 %vm323_vm2, %v317_v20  ;;  %2072 = vmatprep.subr.mxu1 %v2230_v3  ;;  %v635_v27 = vsel %vm634_vm5, %v629_v21, %v631_v16 }
  0x98   : > { %1992 = vmatmul.mubr.msk.f32.vlgmr.msra.gmra.mrb[0].mxu0 %vm319_vm4, %v1989_v19  ;;  %1995 = vmatprep.subr.msk.mxu0 %vm323_vm2, %v2334_v2  ;;  %v633_v22 = vpop.permute.xlu0 %632 }
  0x99   : > { %1996 = vmatpush1.msk.msra.mxu0 %vm323_vm2, %v2329_v1  ;;  %v636_v23 = vsel %vm634_vm5, %v631_v16, %v633_v22  ;;  %2073 = vmatpush3.msk.msra.mxu1 %vm323_vm2, %v2340_v4 }
  0x9a   : > { %2001 = vmatprep.subr.msk.mxu0 %vm323_vm2, %v636_v23  ;;  %2074 = vmatprep.mubr.msk.f32.mxu1 %vm2232_vm1, %v2230_v3  ;;  %v802_v24 = vpop.permute.xlu1 %801 }
  0x9b   : > { %2077 = vmatprep.subr.mxu1 %v2230_v3  ;;  %544 = vmatprep.mubr.f32.mxu0 %v2230_v3 }
  0x9c   : > { %2075 = vmatmul.mubr.msk.f32.vlgmr.msra.gmra.mrb[2].mxu1 %vm319_vm4, %v304_v25  ;;  %v800_v26 = vpop.permute.xlu0 %799 }
  0x9d   : > { %2078 = vmatpush3.msk.msra.mxu1 %vm323_vm2, %v633_v22  ;;  %2079 = vmatprep.mubr.msk.f32.mxu1 %vm2232_vm1, %v2230_v3  ;;  %v805_v29 = vsel %vm803_vm6, %v800_v26, %v802_v24 }
  0x9e   : > { %2082 = vmatprep.subr.mxu1 %v2230_v3  ;;  %v969_v28 = vpop.permute.xlu1 %968 }
  0xa0   : > { %1997 = vmatmul.mubr.msk.f32.vlgmr.msra.gmra.mrb[0].mxu0 %vm319_vm4, %v304_v25  ;;  %v798_v31 = vpop.permute.xlu0 %797  ;;  %2080 = vmatmul.mubr.msk.f32.vlgmr.msra.gmra.mrb[4].mxu1 %vm319_vm4, %v2000_v30 }
  0xa1   : > { %2002 = vmatpush1.msk.msra.mxu0 %vm323_vm2, %v635_v27  ;;  %710 = vmatprep.mubr.f32.mxu0 %v2230_v3  ;;  %v804_v36 = vsel %vm803_vm6, %v798_v31, %v800_v26  ;;  %v1822_v27 = vlaneseq }
  0xa2   : > { %2007 = vmatprep.subr.msk.mxu0 %vm323_vm2, %v805_v29  ;;  %2083 = vmatpush3.msk.msra.mxu1 %vm323_vm2, %v802_v24  ;;  %v967_v33 = vpop.permute.xlu1 %966 }
  0xa3   : > { %2084 = vmatprep.mubr.msk.f32.mxu1 %vm2232_vm1, %v2230_v3  ;;  %2087 = vmatprep.subr.mxu1 %v2230_v3  ;;  %v973_v43 = vsel %vm972_vm7, %v967_v33, %v969_v28 }
  0xa4   : > { %v971_v34 = vpop.permute.xlu0 %970  ;;  %2085 = vmatmul.mubr.msk.f32.vlgmr.msra.gmra.mrb[6].mxu1 %vm319_vm4, %v2006_v32 }
  0xa5   : > { %2088 = vmatpush3.msk.msra.mxu1 %vm323_vm2, %v971_v34  ;;  %2089 = vmatprep.mubr.msk.f32.mxu1 %vm2232_vm1, %v2230_v3  ;;  %v974_v38 = vsel %vm972_vm7, %v969_v28, %v971_v34  ;;  %v1823_v28 = vshrl.u32 %v1822_v27, 7 }
  0xa6   : > { %v1140_v37 = vpop.permute.xlu1 %1139  ;;  %2092 = vmatprep.subr.mxu1 %v2230_v3 }
  0xa7   : > { %v1832_v29 = vsub.s32 2, %v1823_v28  ;;  %v1824_v31 = vsub.s32 0, %v1823_v28 }
  0xa8   : > { %2003 = vmatmul.mubr.msk.f32.vlgmr.msra.gmra.mrb[0].mxu0 %vm319_vm4, %v2000_v30  ;;  %v1138_v39 = vpop.permute.xlu0 %1137  ;;  %2090 = vmatmul.mubr.msk.f32.vlgmr.msra.gmra.mrb[8].mxu1 %vm319_vm4, %v2012_v35  ;;  %v1820_v30 = vld [vmem:[%s2524_s5] sm:$0x7] }
  0xa9   : > { %2008 = vmatpush1.msk.msra.mxu0 %vm323_vm2, %v804_v36  ;;  %879 = vmatprep.mubr.f32.mxu0 %v2230_v3  ;;  %v1143_v45 = vsel %vm1141_vm8, %v1138_v39, %v1140_v37  ;;  %v1833_v33 = vrot.slane %v1820_v30, %v1832_v29  ;;  %v1825_v34 = vrot.slane %v1820_v30, %v1824_v31 }
  0xaa   : > { %2013 = vmatprep.subr.msk.mxu0 %vm323_vm2, %v974_v38  ;;  %v1307_v41 = vpop.permute.xlu1 %1306  ;;  %2093 = vmatpush3.msk.msra.mxu1 %vm323_vm2, %v1140_v37 }
  0xab   : > { %2094 = vmatprep.mubr.msk.f32.mxu1 %vm2232_vm1, %v2230_v3  ;;  %2097 = vmatprep.subr.mxu1 %v2230_v3 }
  0xac   : > { %v1136_v42 = vpop.permute.xlu0 %1135  ;;  %2095 = vmatmul.mubr.msk.f32.vlgmr.msra.gmra.mrb[10].mxu1 %vm319_vm4, %v2018_v40 }
  0xad   : > { %2099 = vmatprep.mubr.msk.f32.mxu1 %vm2232_vm1, %v2230_v3  ;;  %v1142_v51 = vsel %vm1141_vm8, %v1136_v42, %v1138_v39 }
  0xae   : > { %v1305_v44 = vpop.permute.xlu1 %1304 }
  0xaf   : > { %v1311_v56 = vsel %vm1310_vm9, %v1305_v44, %v1307_v41 }
  0xb0   : > { %2009 = vmatmul.mubr.msk.f32.vlgmr.msra.gmra.mrb[0].mxu0 %vm319_vm4, %v2006_v32  ;;  %v1309_v46 = vpop.permute.xlu0 %1308  ;;  %v1828_v32 = vsub.s32 1, %v1823_v28 }
  0xb1   : > { %2014 = vmatpush1.msk.msra.mxu0 %vm323_vm2, %v973_v43  ;;  %1048 = vmatprep.mubr.f32.mxu0 %v2230_v3  ;;  %v1312_v52 = vsel %vm1310_vm9, %v1307_v41, %v1309_v46 }
  0xb2   : > { %2019 = vmatprep.subr.msk.mxu0 %vm323_vm2, %v1143_v45  ;;  %2098 = vmatpush3.msk.msra.mxu1 %vm323_vm2, %v1309_v46  ;;  %v1478_v48 = vpop.permute.xlu1 %1477  ;;  %v1829_v36 = vrot.slane %v1820_v30, %v1828_v32 }
  0xb3   : > { %2100 = vmatmul.mubr.msk.f32.vlgmr.msra.gmra.mrb[12].mxu1 %vm319_vm4, %v2024_v47  ;;  %2102 = vmatprep.subr.mxu1 %v2230_v3 }
  0xb4   : > { %v1476_v49 = vpop.permute.xlu0 %1475  ;;  %2103 = vmatpush3.msk.msra.mxu1 %vm323_vm2, %v1478_v48  ;;  %2104 = vmatprep.mubr.msk.f32.mxu1 %vm2232_vm1, %v2230_v3 }
  0xb5   : > { %2107 = vmatprep.subr.mxu1 %v2230_v3  ;;  %v1481_v57 = vsel %vm1479_vm10, %v1476_v49, %v1478_v48 }
  0xb6   : > { %v1645_v58 = vpop.permute.xlu1 %1644 }
  0xb7   : > { %2105 = vmatmul.mubr.msk.f32.vlgmr.msra.gmra.mrb[14].mxu1 %vm319_vm4, %v2030_v50 }
  0xb8   : > { %2015 = vmatmul.mubr.msk.f32.vlgmr.msra.gmra.mrb[0].mxu0 %vm319_vm4, %v2012_v35  ;;  %v1474_v53 = vpop.permute.xlu0 %1473  ;;  %2109 = vmatprep.mubr.msk.f32.mxu1 %vm2232_vm1, %v2230_v3 }
  0xb9   : > { %2020 = vmatpush1.msk.msra.mxu0 %vm323_vm2, %v1142_v51  ;;  %1217 = vmatprep.mubr.f32.mxu0 %v2230_v3  ;;  %v1480_v59 = vsel %vm1479_vm10, %v1474_v53, %v1476_v49 }
  0xba   : > { %2025 = vmatprep.subr.msk.mxu0 %vm323_vm2, %v1312_v52  ;;  %v1643_v61 = vpop.permute.xlu1 %1642  ;;  %v1840_v52 = vld [vmem:[#allocation3] sm:$0xff] }
  0xbb   : > { %v1649_v62 = vsel %vm1648_vm11, %v1643_v61, %v1645_v58 }
  0xbc   : > { %v1647_v55 = vpop.permute.xlu0 %1646 }
  0xbd   : > { %2108 = vmatpush3.msk.msra.mxu1 %vm323_vm2, %v1647_v55  ;;  %v1650_v60 = vsel %vm1648_vm11, %v1645_v58, %v1647_v55 }
  0xbe   : > { %2110 = vmatmul.mubr.msk.f32.vlgmr.msra.gmra.mrb[16].mxu1 %vm319_vm4, %v2036_v54 }
  0xc0   : > { %2021 = vmatmul.mubr.msk.f32.vlgmr.msra.gmra.mrb[0].mxu0 %vm319_vm4, %v2018_v40 }
  0xc1   : > { %2026 = vmatpush1.msk.msra.mxu0 %vm323_vm2, %v1311_v56  ;;  %1386 = vmatprep.mubr.f32.mxu0 %v2230_v3 }
  0xc2   : > { %2031 = vmatprep.subr.msk.mxu0 %vm323_vm2, %v1481_v57 }
  0xc8   : > { %2027 = vmatmul.mubr.msk.f32.vlgmr.msra.gmra.mrb[0].mxu0 %vm319_vm4, %v2024_v47 }
  0xc9   : > { %2032 = vmatpush1.msk.msra.mxu0 %vm323_vm2, %v1480_v59  ;;  %1555 = vmatprep.mubr.f32.mxu0 %v2230_v3 }
  0xca   : > { %2037 = vmatprep.subr.msk.mxu0 %vm323_vm2, %v1650_v60 }
  0xcd   : > { %v1808_v23 = vpop.permute.xlu0 %1807 }
  0xd0   : > { %2033 = vmatmul.mubr.msk.f32.vlgmr.msra.gmra.mrb[0].mxu0 %vm319_vm4, %v2030_v50 }
  0xd1   : > { %2038 = vmatpush1.msk.msra.mxu0 %vm323_vm2, %v1649_v62  ;;  %1724 = vmatprep.mubr.f32.mxu0 %v2230_v3 }
  0xd8   : > { %2039 = vmatmul.mubr.msk.f32.vlgmr.msra.gmra.mrb[0].mxu0 %vm319_vm4, %v2036_v54  ;;  %v1849_v54 = vld [vmem:[#allocation4] sm:$0xff] }
 0x169   : > { %v467_v63 = vpop.f32.mrb[0].mxu1 }
 0x16a   : > { %v2071_v0 = vpop.f32.mrb[1].mxu1 }
 0x16f   : > { %v617_v1 = vpop.f32.mrb[2].mxu1 }
 0x170   : > { %v618_v2 = vadd.f32 %v617_v1, %v467_v63  ;;  %v2076_v4 = vpop.f32.mrb[3].mxu1 }
 0x173   : > { %v783_v5 = vpop.f32.mrb[4].mxu1 }
 0x174   : > { %v789_v6 = vadd.f32 %v783_v5, %v618_v2  ;;  %v2081_v7 = vpop.f32.mrb[5].mxu1 }
 0x177   : > { %v952_v8 = vpop.f32.mrb[6].mxu1 }
 0x178   : > { %v958_v9 = vadd.f32 %v952_v8, %v789_v6  ;;  %v2086_v10 = vpop.f32.mrb[7].mxu1 }
 0x17b   : > { %v1121_v11 = vpop.f32.mrb[8].mxu1 }
 0x17c   : > { %v1127_v12 = vadd.f32 %v1121_v11, %v958_v9  ;;  %v2091_v13 = vpop.f32.mrb[9].mxu1 }
 0x17f   : > { %v1290_v14 = vpop.f32.mrb[10].mxu1 }
 0x180   : > { %v1296_v15 = vadd.f32 %v1290_v14, %v1127_v12  ;;  %v2096_v3 = vpop.f32.mrb[11].mxu1 }
 0x186   : > { %v1459_v16 = vpop.f32.mrb[12].mxu1 }
 0x187   : > { %v1465_v17 = vadd.f32 %v1459_v16, %v1296_v15  ;;  %v2101_v18 = vpop.f32.mrb[13].mxu1 }
 0x18a   : > { %v1628_v19 = vpop.f32.mrb[14].mxu1 }
 0x18b   : > { %v1634_v20 = vadd.f32 %v1628_v19, %v1465_v17  ;;  %v2106_v21 = vpop.f32.mrb[15].mxu1 }
 0x191   : > { %v1797_v22 = vpop.f32.mrb[16].mxu1 }
 0x192   : > { %v1803_v24 = vadd.f32 %v1797_v22, %v1634_v20  ;;  %v2111_v25 = vpop.f32.mrb[17].mxu1 }
 0x194   : > { %v1812_v26 = vadd.f32 %v1808_v23, %v1803_v24 }
 0x196   : > { %1819 = vst.msk [vmem:[%s1815_s13 + $0x10] sm:$0xff] %vm1818_vm12, %v1812_v26  ;;  %v1839_v39 = vmul.f32 %v1833_v33, %v1812_v26 }
 0x198   : > { %v1852_v44 = vmul.f32 %v1839_v39, %v1812_v26  ;;  %v1842_v47 = vsel %vm1818_vm12, %v1839_v39, 0.0 }
 0x19a   : > { %v1854_v50 = vsel %vm1818_vm12, %v1852_v44, 0.0 }
 0x1ab   : > { %v1726_v35 = vpop.f32.mrb[0].mxu0 }
 0x1ac   : > { %v1810_v37 = vadd.f32 %v1808_v23, %v1726_v35  ;;  %v1728_v38 = vpop.f32.mrb[1].mxu0 }
 0x1ad   : > { %v1811_v40 = vadd.f32 %v1808_v23, %v1728_v38 }
 0x1ae   : > { %1816 = vst [vmem:[%s1815_s13] sm:$0xff] %v1810_v37  ;;  %v1837_v41 = vmul.f32 %v1825_v34, %v1810_v37 }
 0x1af   : > { %1817 = vst [vmem:[%s1815_s13 + $0x8] sm:$0xff] %v1811_v40  ;;  %v1838_v42 = vmul.f32 %v1829_v36, %v1811_v40 }
 0x1b0   : > { %v1850_v43 = vmul.f32 %v1837_v41, %v1810_v37 }
 0x1b1   : > { %v1851_v45 = vmul.f32 %v1838_v42, %v1811_v40  ;;  %v1841_v46 = vadd.f32 %v1838_v42, %v1837_v41 }
 0x1b3   : > { %v1843_v48 = vadd.f32 %v1842_v47, %v1841_v46  ;;  %v1853_v49 = vadd.f32 %v1851_v45, %v1850_v43 }
 0x1b5   : > { %1844 = vadd.xlane.f32.xlu1 %v1843_v48  ;;  %v1855_v51 = vadd.f32 %v1854_v50, %v1853_v49 }
 0x1b7   : > { %1856 = vadd.xlane.f32.xlu0 %v1855_v51 }
 0x242   : > { %v1845_v53 = vpop.xlane.xlu1 %1844 }
 0x243   : > { %v1846_v55 = vadd.f32 %v1845_v53, %v1840_v52 }
 0x244   : > { %v1857_v56 = vpop.xlane.xlu0 %1856 }
 0x245   : > { %1848 = vst.msk [vmem:[#allocation3] sm:$0xff] %vm1847_vm13, %v1846_v55  ;;  %v1858_v57 = vadd.f32 %v1857_v56, %v1849_v54 }
 0x247   : > { %1859 = vst.msk [vmem:[#allocation4] sm:$0xff] %vm1847_vm13, %v1858_v57 }
 0x248 PF: > { %p2043_p11 = scmp.ne.s32.totalorder %s2214_s22, 1 }
 0x249   : > { %v2240_v60 = vmov (!%p2043_p11), 0   ;;  %v1871_v4 = vld [vmem:[%s2522_s3] sm:$0xff] (!%p2043_p11)  ;;  %s2048_s19 = smul.u32 (!%p2043_p11), 24, %s2210_s21  ;;  %vm1905_vm14 = vcmask (!%p2043_p11), 261120  }
 0x24a   : > { %1863 = sbr.rel (%p2043_p11) target bundleno = 750 (0x2ee), region = 56  ;;  %2185 = vset.pattern.permute.xlu0 (!%p2043_p11), %v2240_v60  ;;  %v1875_v7 = vld [vmem:[%s2523_s4] sm:$0xff] (!%p2043_p11) }
 0x24b   : > { %s1880_s20 = scalar_lea.vmem (!%p2043_p11), [#allocation2], %s2048_s19 }
 0x24c   : > { %v1864_v58 = vld [vmem:[#allocation3] sm:$0xff] (!%p2043_p11)  ;;  %v1881_v10 = vld [vmem:[%s1880_s20] sm:$0xff] (!%p2043_p11)  ;;  %v1882_v11 = vld [vmem:[%s1880_s20 + $0x8] sm:$0xff] (!%p2043_p11) }
 0x24d   : > { %v1865_v61 = vmul.f32 (!%p2043_p11), 0.001953125, %v1864_v58  ;;  %v1883_v12 = vld [vmem:[%s1880_s20 + $0x10] sm:$0xff] (!%p2043_p11) }
 0x24e   : > { %v1866_v59 = vld [vmem:[#allocation4] sm:$0xff] (!%p2043_p11) }
 0x24f   : > { %v1867_v62 = vmul.f32 (!%p2043_p11), 0.001953125, %v1866_v59  ;;  %v1868_v63 = vmul.f32 (!%p2043_p11), %v1865_v61, %v1865_v61 }
 0x251   : > { %v1869_v0 = vsub.f32 %v1867_v62, %v1868_v63 }
 0x253   : > { %v1870_v1 = vmax.f32 %v1869_v0, 0.0 }
 0x255   : > { %v1872_v2 = vadd.f32 1e-05, %v1870_v1 }
 0x257   : > { %2186 = vrsqrt.f32 %v1872_v2 }
 0x261   : > { %v2187_v5 = vpop.eup %2186 }
 0x262   : > { %v1874_v6 = vmul.f32 %v2187_v5, %v1871_v4 }
 0x264   : > { %1886 = vperm.xlu0 %2185, %v1874_v6   ;;  %v1876_v8 = vmul.f32 %v1874_v6, %v1865_v61 }
 0x266   : > { %v1877_v9 = vsub.f32 %v1875_v7, %v1876_v8 }
 0x268   : > { %1894 = vperm.xlu0 %2185, %v1877_v9  }
 0x2e3   : > { %v1887_v13 = vpop.permute.xlu0 %1886 }
 0x2e4   : > { %v1889_v14 = vmul.f32 %v1887_v13, %v1881_v10  ;;  %v1890_v15 = vmul.f32 %v1887_v13, %v1882_v11  ;;  %v1891_v3 = vmul.f32 %v1887_v13, %v1883_v12 }
 0x2e7   : > { %v1895_v16 = vpop.permute.xlu0 %1894 }
 0x2e8   : > { %v1897_v17 = vadd.f32 %v1895_v16, %v1889_v14  ;;  %v1898_v18 = vadd.f32 %v1895_v16, %v1890_v15  ;;  %v1899_v19 = vadd.f32 %v1895_v16, %v1891_v3 }
 0x2ea   : > { %v1900_v20 = vmax.f32 %v1897_v17, 0.0  ;;  %v1901_v21 = vmax.f32 %v1898_v18, 0.0  ;;  %v1902_v22 = vmax.f32 %v1899_v19, 0.0 }
 0x2ec   : > { %1903 = vst [vmem:[%s2320_s12] sm:$0xff] %v1900_v20  ;;  %1904 = vst [vmem:[%s2320_s12 + $0x8] sm:$0xff] %v1901_v21 }
 0x2ed   : > { %1906 = vst.msk [vmem:[%s2320_s12 + $0x10] sm:$0xff] %vm1905_vm14, %v1902_v22 }
 0x2ee PF: > { %s16_s25 = sadd.s32 1, %s2226_s25   ;;  %s2526_s21 = smov %s2218_s23 }
 0x2ef   : > { %p13_p12 = scmp.ge.s32.totalorder %s16_s25, 6   ;;  %s2527_s22 = smov %s2222_s24 }
 0x2f0   : > { %s2528_s23 = smov %s2531_s26  ;;  %s2529_s24 = smov %s2535_s27 }
 0x2f1   :  { %15 = sbr.rel (!%p13_p12) target bundleno = 3 (0x3), region = 96 }

</bundles_post_ra>
